<compile_context>
chip_gen: v7x
topology: tpu7x:2x2x1
jax: 0.10.0
libtpu: 0.0.40
codegen_flags: <defaults>
</compile_context>

<pallas_src>
import functools

import jax
import jax.numpy as jnp
from jax.experimental import pallas as pl
from jax.experimental.pallas import tpu as pltpu

LANE = 128
SUBLANE = 8


def _round_up(n, m):
    return ((n + m - 1) // m) * m


def augru_kernel(x_ref, h_ref, wx_ref, wh_ref, b_ref, out_ref, *,
                 hidden_size, att_lane, dot_dtype):
    """One batch tile of the AUGRU cell.

    x_ref  : (TB, Ip)   f32, x in lanes [0:I], attention score in lane `att_lane`
    h_ref  : (TB, Hp)   f32, previous hidden state (lane zero-padded)
    wx_ref : (Ip, Ng)   dot_dtype, gate columns [r | u | i_n | 0]
    wh_ref : (Hp, Ng)   dot_dtype, gate columns [r | u | 0 | h_n]
    b_ref  : (1, Ng)    f32 fused bias row
    out_ref: (TB, Hp)   f32, new hidden state (lane zero-padded)
    """
    H = hidden_size

    x = x_ref[...]
    h = h_ref[...]

    # Two MXU dots (x-side / h-side) accumulated into one f32 gate buffer.
    # (Splitting per-operand already drops half of the structural zero blocks
    #  of a single [x|h] fused matmul.)
    xd = x.astype(dot_dtype)
    hd = h.astype(dot_dtype)
    s = jnp.dot(xd, wx_ref[...], preferred_element_type=jnp.float32)
    s = s + jnp.dot(hd, wh_ref[...], preferred_element_type=jnp.float32)
    s = s + b_ref[...]

    # Packed gate views at H-lane offsets (cheap selects, no 4x lane padding).
    s_r = s[:, 0 * H:1 * H]       # i_r + h_r (+ biases)
    s_u = s[:, 1 * H:2 * H]       # i_u + h_u (+ biases)
    s_in = s[:, 2 * H:3 * H]      # i_h (+ b_ih_n)
    s_hn = s[:, 3 * H:4 * H]      # h_h (+ b_hh_n)

    reset_gate = jax.nn.sigmoid(s_r)
    update_gate = jax.nn.sigmoid(s_u)
    new_state = jnp.tanh(s_in + reset_gate * s_hn)

    # Attention score lives in a zero-weighted lane of the (f32) x slab.
    att = x[:, att_lane:att_lane + 1]
    ug = att * update_gate                       # attentional update gate
    h_prev = h[:, :H]
    h_new = h_prev + ug * (new_state - h_prev)   # == (1-ug)*h + ug*new_state

    hp_out = out_ref.shape[-1]
    if hp_out == H:
        out_ref[...] = h_new
    else:
        # Lane-dense, unmasked full-width store (padding lanes set to zero).
        pad = jnp.zeros((h_new.shape[0], hp_out - H), h_new.dtype)
        out_ref[...] = jnp.concatenate([h_new, pad], axis=-1)


def prepare_augru_params(weight_ih, weight_hh, bias_ih=None, bias_hh=None,
                         dot_dtype=jnp.bfloat16):
    """One-time parameter fusion / padding (call at model init, not per step).

    weight_ih : (3H, I)  PyTorch layout, gate order [reset, update, new]
    weight_hh : (3H, H)
    bias_ih   : (3H,) or None
    bias_hh   : (3H,) or None
    dot_dtype : MXU input dtype (bf16 for v6e/v7x perf, f32 for exact math)

    Returns (w_x, w_h, b, meta):
      w_x : (Ip, Ng) dot_dtype, Ip = round_up(I+1, 128) (one spare lane for att)
      w_h : (Hp, Ng) dot_dtype, Hp = round_up(H, 128)
      b   : (1, Ng)  f32,       Ng = round_up(4H, 128)
    """
    H = weight_hh.shape[-1]
    I = weight_ih.shape[-1]
    Ng = _round_up(4 * H, LANE)
    Ip = _round_up(I + 1, LANE)      # +1 lane reserved for the attention score
    Hp = _round_up(H, LANE)

    w_ih = weight_ih.astype(jnp.float32)
    w_hh = weight_hh.astype(jnp.float32)
    if bias_ih is None:
        bias_ih = jnp.zeros((3 * H,), jnp.float32)
    if bias_hh is None:
        bias_hh = jnp.zeros((3 * H,), jnp.float32)
    b_ih = bias_ih.astype(jnp.float32)
    b_hh = bias_hh.astype(jnp.float32)

    wir, wiu, win = w_ih[:H], w_ih[H:2 * H], w_ih[2 * H:]
    whr, whu, whn = w_hh[:H], w_hh[H:2 * H], w_hh[2 * H:]
    bir, biu, bin_ = b_ih[:H], b_ih[H:2 * H], b_ih[2 * H:]
    bhr, bhu, bhn = b_hh[:H], b_hh[H:2 * H], b_hh[2 * H:]

    # x-side weight block: columns [r | u | i_n | 0]; rows I:Ip (incl. att lane) zero.
    w_x = jnp.zeros((Ip, Ng), jnp.float32)
    w_x = w_x.at[:I, 0 * H:1 * H].set(wir.T)
    w_x = w_x.at[:I, 1 * H:2 * H].set(wiu.T)
    w_x = w_x.at[:I, 2 * H:3 * H].set(win.T)

    # h-side weight block: columns [r | u | 0 | h_n].
    w_h = jnp.zeros((Hp, Ng), jnp.float32)
    w_h = w_h.at[:H, 0 * H:1 * H].set(whr.T)
    w_h = w_h.at[:H, 1 * H:2 * H].set(whu.T)
    w_h = w_h.at[:H, 3 * H:4 * H].set(whn.T)

    # Fused bias row (kept f32; added after the f32-accumulated matmuls).
    b = jnp.zeros((1, Ng), jnp.float32)
    b = b.at[0, 0 * H:1 * H].set(bir + bhr)
    b = b.at[0, 1 * H:2 * H].set(biu + bhu)
    b = b.at[0, 2 * H:3 * H].set(bin_)
    b = b.at[0, 3 * H:4 * H].set(bhn)

    meta = dict(input_size=I, hidden_size=H, i_pad=Ip, h_pad=Hp, n_gates=Ng,
                dot_dtype=dot_dtype)
    return w_x.astype(dot_dtype), w_h.astype(dot_dtype), b, meta


def _choose_batch_tile(B, block_b):
    # Clamp to a multiple of 8 sublanes (correctness: (8,128) BlockSpec rule).
    block_b = max(SUBLANE, (block_b // SUBLANE) * SUBLANE)
    tb = min(block_b, _round_up(B, SUBLANE))
    # Prefer >= 2 grid tiles when the batch allows it, so both v7x TCs get work.
    half = max(SUBLANE, _round_up((B + 1) // 2, SUBLANE))
    return min(tb, half)


def augru_cell(x, h, att_score, w_x, w_h, b, meta, *, block_b=256):
    """AUGRUCell forward with fused, gate-packed, lane-padded parameters.

    x         : (B, input_size)
    h         : (B, hidden_size)
    att_score : (B,) or (B, 1)
    w_x/w_h/b/meta : from prepare_augru_params()
    """
    B = x.shape[0]
    I = meta["input_size"]
    H = meta["hidden_size"]
    Ip = meta["i_pad"]
    Hp = meta["h_pad"]
    Ng = meta["n_gates"]
    dot_dtype = meta["dot_dtype"]

    TB = _choose_batch_tile(B, block_b)
    Bp = _round_up(B, TB)
    n_tiles = Bp // TB

    x32 = x.astype(jnp.float32)
    h32 = h.astype(jnp.float32)
    att32 = att_score.reshape(-1).astype(jnp.float32)   # mirrors .view(-1, 1)

    # x slab: [x | att | 0] — attention folded into the spare zero-weighted lane.
    x_slab = jnp.zeros((Bp, Ip), jnp.float32)
    x_slab = x_slab.at[:B, :I].set(x32)
    x_slab = x_slab.at[:B, I].set(att32)

    if Bp == B and Hp == H:
        h_slab = h32
    else:
        h_slab = jnp.zeros((Bp, Hp), jnp.float32).at[:B, :H].set(h32)

    kern = functools.partial(augru_kernel, hidden_size=H, att_lane=I,
                             dot_dtype=dot_dtype)

    w_bytes = jnp.dtype(dot_dtype).itemsize
    cost = pl.CostEstimate(
        flops=2 * Bp * (Ip + Hp) * Ng,
        transcendentals=3 * Bp * H,
        bytes_accessed=4 * Bp * (Ip + 2 * Hp) + w_bytes * (Ip + Hp) * Ng + 4 * Ng,
    )

    # Rough VMEM footprint: 2x-buffered activation tiles + resident weights/bias.
    est_vmem = (2 * TB * (Ip + 2 * Hp) * 4
                + 2 * (Ip + Hp) * Ng * w_bytes + 2 * Ng * 4 + (1 << 20))
    cp_kwargs = dict(dimension_semantics=("parallel",))
    if est_vmem > (32 << 20):
        cp_kwargs["vmem_limit_bytes"] = min(est_vmem, 100 << 20)
    # TODO(synk): for very large I+H on v7x (64 MiB VMEM), single-buffer the
    #             invariant weight specs or add a K grid axis with an accumulator.

    out_pad = pl.pallas_call(
        kern,
        out_shape=jax.ShapeDtypeStruct((Bp, Hp), jnp.float32),
        grid=(n_tiles,),
        in_specs=[
            pl.BlockSpec((TB, Ip), lambda i: (i, 0)),     # x (+att) batch tile
            pl.BlockSpec((TB, Hp), lambda i: (i, 0)),     # h batch tile
            pl.BlockSpec((Ip, Ng), lambda i: (0, 0)),     # x weights (VMEM resident)
            pl.BlockSpec((Hp, Ng), lambda i: (0, 0)),     # h weights (VMEM resident)
            pl.BlockSpec((1, Ng), lambda i: (0, 0)),      # fused bias row
        ],
        out_specs=pl.BlockSpec((TB, Hp), lambda i: (i, 0)),
        compiler_params=pltpu.CompilerParams(**cp_kwargs),
        cost_estimate=cost,
    )(x_slab, h_slab, w_x, w_h, b)

    if Bp == B and Hp == H:
        return out_pad
    return out_pad[:B, :H]


def augru_cell_ref(x, h, att_score, weight_ih, weight_hh, bias_ih, bias_hh,
                   dot_dtype=jnp.float32):
    """Pure-JAX reference mirroring the PyTorch forward (dot_dtype selects MXU precision)."""
    H = h.shape[-1]
    xd = x.astype(dot_dtype)
    hd = h.astype(dot_dtype)
    gi = jnp.dot(xd, weight_ih.astype(dot_dtype).T,
                 preferred_element_type=jnp.float32) + bias_ih
    gh = jnp.dot(hd, weight_hh.astype(dot_dtype).T,
                 preferred_element_type=jnp.float32) + bias_hh
    i_r, i_u, i_h = gi[:, :H], gi[:, H:2 * H], gi[:, 2 * H:]
    h_r, h_u, h_h = gh[:, :H], gh[:, H:2 * H], gh[:, 2 * H:]
    reset = jax.nn.sigmoid(i_r + h_r)
    update = jax.nn.sigmoid(i_u + h_u)
    new_state = jnp.tanh(i_h + reset * h_h)
    att = att_score.reshape(-1, 1).astype(jnp.float32)
    update = att * update
    return (1.0 - update) * h.astype(jnp.float32) + update * new_state


if __name__ == "__main__":
    B, INPUT_SIZE, HIDDEN_SIZE = 10, 16, 32

    key = jax.random.PRNGKey(0)
    kx, kh, ka, kwi, kwh = jax.random.split(key, 5)

    x = jax.random.normal(kx, (B, INPUT_SIZE), dtype=jnp.float32)
    h = jax.random.normal(kh, (B, HIDDEN_SIZE), dtype=jnp.float32)
    att_score = jax.random.uniform(ka, (B,), dtype=jnp.float32)

    # Parameter init mirroring __init__: randn weights, zero biases.
    weight_ih = jax.random.normal(kwi, (3 * HIDDEN_SIZE, INPUT_SIZE), dtype=jnp.float32)
    weight_hh = jax.random.normal(kwh, (3 * HIDDEN_SIZE, HIDDEN_SIZE), dtype=jnp.float32)
    bias_ih = jnp.zeros((3 * HIDDEN_SIZE,), dtype=jnp.float32)
    bias_hh = jnp.zeros((3 * HIDDEN_SIZE,), dtype=jnp.float32)

    # --- exact f32 path: matches the PyTorch forward ---
    wx32, wh32, b32, meta32 = prepare_augru_params(
        weight_ih, weight_hh, bias_ih, bias_hh, dot_dtype=jnp.float32)
    out_f32 = jax.block_until_ready(
        augru_cell(x, h, att_score, wx32, wh32, b32, meta32))
    ref_f32 = augru_cell_ref(x, h, att_score, weight_ih, weight_hh,
                             bias_ih, bias_hh, dot_dtype=jnp.float32)
    assert out_f32.shape == (B, HIDDEN_SIZE)
    assert jnp.allclose(out_f32, ref_f32, atol=1e-4, rtol=1e-4), "f32 mismatch"

    # --- bf16-MXU perf path (v6e/v7x) vs a precision-matched reference ---
    wxb, whb, bb, metab = prepare_augru_params(
        weight_ih, weight_hh, bias_ih, bias_hh, dot_dtype=jnp.bfloat16)
    out_bf16 = jax.block_until_ready(
        augru_cell(x, h, att_score, wxb, whb, bb, metab))
    ref_bf16 = augru_cell_ref(x, h, att_score, weight_ih, weight_hh,
                              bias_ih, bias_hh, dot_dtype=jnp.bfloat16)
    assert out_bf16.shape == (B, HIDDEN_SIZE)
    assert jnp.allclose(out_bf16, ref_bf16, atol=1e-3, rtol=1e-3), "bf16 mismatch"

    print("KERNEL_OK")
</pallas_src>

<mosaic_0001>
module attributes {stable_mosaic.version = 11 : i64} {
  func.func @augru_kernel(%arg0: i32, %arg1: memref<8x128xf32, #tpu.memory_space<vmem>>, %arg2: memref<8x128xf32, #tpu.memory_space<vmem>>, %arg3: memref<128x128xf32, #tpu.memory_space<vmem>>, %arg4: memref<128x128xf32, #tpu.memory_space<vmem>>, %arg5: memref<1x128xf32, #tpu.memory_space<vmem>>, %arg6: memref<8x128xf32, #tpu.memory_space<vmem>>) attributes {dimension_semantics = [#tpu.dimension_semantics<parallel>], iteration_bounds = array<i64: 2>, scalar_prefetch = 0 : i64, scratch_operands = 0 : i64, tpu.core_type = #tpu.core_type<tc>, window_params = [{transform_indices = @transform_0, window_bounds = array<i64: 8, 128>}, {transform_indices = @transform_1, window_bounds = array<i64: 8, 128>}, {pipeline_mode = #tpu.pipeline_mode<synchronous>, transform_indices = @transform_2, window_bounds = array<i64: 128, 128>}, {pipeline_mode = #tpu.pipeline_mode<synchronous>, transform_indices = @transform_3, window_bounds = array<i64: 128, 128>}, {pipeline_mode = #tpu.pipeline_mode<synchronous>, transform_indices = @transform_4, window_bounds = array<i64: 1, 128>}, {transform_indices = @transform_5, window_bounds = array<i64: 8, 128>}]} {
    %c0 = arith.constant 0 : index
    %c0_0 = arith.constant 0 : index
    %0 = vector.load %arg1[%c0, %c0_0] : memref<8x128xf32, #tpu.memory_space<vmem>>, vector<8x128xf32>
    %c0_1 = arith.constant 0 : index
    %c0_2 = arith.constant 0 : index
    %1 = vector.load %arg2[%c0_1, %c0_2] : memref<8x128xf32, #tpu.memory_space<vmem>>, vector<8x128xf32>
    %c0_3 = arith.constant 0 : index
    %c0_4 = arith.constant 0 : index
    %2 = vector.load %arg3[%c0_3, %c0_4] : memref<128x128xf32, #tpu.memory_space<vmem>>, vector<128x128xf32>
    %cst = arith.constant dense<0.000000e+00> : vector<8x128xf32>
    %3 = tpu.matmul %0, %2, %cst {dimension_numbers = #tpu.dot_dimension_numbers<[1], [0], [0], [1], [0, 0, 1, 1], [], []>} : vector<8x128xf32>, vector<128x128xf32>, vector<8x128xf32> -> vector<8x128xf32>
    %c0_5 = arith.constant 0 : index
    %c0_6 = arith.constant 0 : index
    %4 = vector.load %arg4[%c0_5, %c0_6] : memref<128x128xf32, #tpu.memory_space<vmem>>, vector<128x128xf32>
    %cst_7 = arith.constant dense<0.000000e+00> : vector<8x128xf32>
    %5 = tpu.matmul %1, %4, %cst_7 {dimension_numbers = #tpu.dot_dimension_numbers<[1], [0], [0], [1], [0, 0, 1, 1], [], []>} : vector<8x128xf32>, vector<128x128xf32>, vector<8x128xf32> -> vector<8x128xf32>
    %6 = arith.addf %3, %5 : vector<8x128xf32>
    %c0_8 = arith.constant 0 : index
    %c0_9 = arith.constant 0 : index
    %7 = vector.load %arg5[%c0_8, %c0_9] : memref<1x128xf32, #tpu.memory_space<vmem>>, vector<1x128xf32>
    %8 = vector.broadcast %7 : vector<1x128xf32> to vector<8x128xf32>
    %9 = arith.addf %6, %8 : vector<8x128xf32>
    %10 = vector.extract_strided_slice %9 {offsets = [0, 0], sizes = [8, 32], strides = [1, 1]} : vector<8x128xf32> to vector<8x32xf32>
    %11 = vector.extract_strided_slice %9 {offsets = [0, 32], sizes = [8, 32], strides = [1, 1]} : vector<8x128xf32> to vector<8x32xf32>
    %12 = vector.extract_strided_slice %9 {offsets = [0, 64], sizes = [8, 32], strides = [1, 1]} : vector<8x128xf32> to vector<8x32xf32>
    %13 = vector.extract_strided_slice %9 {offsets = [0, 96], sizes = [8, 32], strides = [1, 1]} : vector<8x128xf32> to vector<8x32xf32>
    %14 = arith.negf %10 : vector<8x32xf32>
    %15 = math.exp %14 : vector<8x32xf32>
    %cst_10 = arith.constant 1.000000e+00 : f32
    %16 = vector.broadcast %cst_10 : f32 to vector<8x32xf32>
    %17 = arith.addf %16, %15 : vector<8x32xf32>
    %18 = arith.divf %16, %17 : vector<8x32xf32>
    %19 = arith.negf %11 : vector<8x32xf32>
    %20 = math.exp %19 : vector<8x32xf32>
    %cst_11 = arith.constant 1.000000e+00 : f32
    %21 = vector.broadcast %cst_11 : f32 to vector<8x32xf32>
    %22 = arith.addf %21, %20 : vector<8x32xf32>
    %23 = arith.divf %21, %22 : vector<8x32xf32>
    %24 = arith.mulf %18, %13 : vector<8x32xf32>
    %25 = arith.addf %12, %24 : vector<8x32xf32>
    %26 = math.tanh %25 : vector<8x32xf32>
    %27 = vector.extract_strided_slice %0 {offsets = [0, 16], sizes = [8, 1], strides = [1, 1]} : vector<8x128xf32> to vector<8x1xf32>
    %28 = vector.broadcast %27 : vector<8x1xf32> to vector<8x32xf32>
    %29 = arith.mulf %28, %23 : vector<8x32xf32>
    %30 = vector.extract_strided_slice %1 {offsets = [0, 0], sizes = [8, 32], strides = [1, 1]} : vector<8x128xf32> to vector<8x32xf32>
    %31 = arith.subf %26, %30 : vector<8x32xf32>
    %32 = arith.mulf %29, %31 : vector<8x32xf32>
    %33 = arith.addf %30, %32 : vector<8x32xf32>
    %cst_12 = arith.constant 0.000000e+00 : f32
    %34 = vector.broadcast %cst_12 : f32 to vector<8x96xf32>
    %35 = tpu.concatenate %33, %34 in 1 : vector<8x32xf32>, vector<8x96xf32> -> vector<8x128xf32>
    %c0_13 = arith.constant 0 : index
    %c0_14 = arith.constant 0 : index
    %36 = vector.load %arg6[%c0_13, %c0_14] : memref<8x128xf32, #tpu.memory_space<vmem>>, vector<8x128xf32>
    tpu.vector_store %arg6[%c0_13, %c0_14], %35 {strides = array<i32>} : memref<8x128xf32, #tpu.memory_space<vmem>>, vector<8x128xf32>,
    return
  }
  func.func @transform_0(%arg0: i32) -> (i32, i32) {
    %c0_i32 = arith.constant 0 : i32
    %c0_i32_0 = arith.constant 0 : i32
    return %arg0, %c0_i32 : i32, i32
  }
  func.func @transform_1(%arg0: i32) -> (i32, i32) {
    %c0_i32 = arith.constant 0 : i32
    %c0_i32_0 = arith.constant 0 : i32
    return %arg0, %c0_i32 : i32, i32
  }
  func.func @transform_2(%arg0: i32) -> (i32, i32) {
    %c0_i32 = arith.constant 0 : i32
    %c0_i32_0 = arith.constant 0 : i32
    %c0_i32_1 = arith.constant 0 : i32
    return %c0_i32, %c0_i32_0 : i32, i32
  }
  func.func @transform_3(%arg0: i32) -> (i32, i32) {
    %c0_i32 = arith.constant 0 : i32
    %c0_i32_0 = arith.constant 0 : i32
    %c0_i32_1 = arith.constant 0 : i32
    return %c0_i32, %c0_i32_0 : i32, i32
  }
  func.func @transform_4(%arg0: i32) -> (i32, i32) {
    %c0_i32 = arith.constant 0 : i32
    %c0_i32_0 = arith.constant 0 : i32
    %c0_i32_1 = arith.constant 0 : i32
    return %c0_i32, %c0_i32_0 : i32, i32
  }
  func.func @transform_5(%arg0: i32) -> (i32, i32) {
    %c0_i32 = arith.constant 0 : i32
    %c0_i32_0 = arith.constant 0 : i32
    return %arg0, %c0_i32 : i32, i32
  }
}

</mosaic_0001>

<bundles_post_ra>
// kernel: tpu_custom_call.1
= control target key start
LH: loop header
LB: loop body
LE: loop exit
PB: predicated region body
PF: predicated region fallthrough
CT: control target
= control target key end

     0   :  { %s1461_s0 = inlined_call_operand.hbm [shape: f32[16,128], index: 0, kind: input, shape index: {}]   ;;  %s1462_s1 = inlined_call_operand.hbm [shape: f32[16,128], index: 1, kind: input, shape index: {}]   ;;  %s1463_s2 = inlined_call_operand.hbm [shape: f32[128,128], index: 2, kind: input, shape index: {}]   ;;  %s1464_s3 = inlined_call_operand.hbm [shape: f32[128,128], index: 3, kind: input, shape index: {}]   ;;  %s1465_s4 = inlined_call_operand.vmem [shape: f32[1,128], index: 4, kind: input, shape index: {}]   ;;  %s1466_s5 = inlined_call_operand.hbm [shape: f32[16,128], index: 5, kind: output, shape index: {}]  }
   0x1   :  { %1471 = sst [smem:[#allocation16_spill]] %s1463_s2 }
   0x2   :  { %1472 = sst [smem:[#allocation17_spill]] %s1464_s3 }
   0x3   :  { %10 = vsyncpa [#allocation3], 0 }
   0x4   :  { %12 = vsyncpa [#allocation3 + $0x1], 0 }
   0x5   :  { %13 = vsyncpa [#allocation6], 0 }
   0x6   :  { %15 = vsyncpa [#allocation6 + $0x1], 0 }
   0x7   :  { %16 = vsyncpa [#allocation9], 0 }
   0x8   :  { %17 = vsyncpa [#allocation4], 0 }
   0x9   :  { %19 = vsyncpa [#allocation4 + $0x1], 0  ;;  %s1157_s18 = smov 0   ;;  %s1159_s19 = smov 0  }
   0xa   :  { %s1161_s20 = smov 0   ;;  %s1163_s21 = smov 0  }
   0xb LB: > { %s1178_s22 = sadd.s32 4294967295, %s1111_s21   ;;  %s655_s23 = sadd.s32 4294967294, %s1111_s21   ;;  %s1111_s21 = sphi %s1163_s21, %s1494_s21   ;;  %s1107_s20 = sphi %s1161_s20, %s1493_s20   ;;  %s1103_s19 = sphi %s1159_s19, %s1492_s19   ;;  %s1099_s18 = sphi %s1157_s18, %s1491_s18  }
   0xc   : > { %p45_p0 = scmp.ne.s32.totalorder %s1103_s19, %s1099_s18  ;;  %p1467_p1 = scmp.eq.s32.totalorder %s1178_s22, 0 }
   0xd   : > { %p164_p3 = scmp.eq.s32.totalorder %s655_s23, 1  ;;  %p656_p5 = scmp.ge.s32.totalorder %s1111_s21, 1 }
   0xe   : > { %p1187_p4 = por %p1467_p1, %p45_p0  ;;  %p171_p7 = scmp.lt.s32.totalorder %s1111_s21, 3 }
   0xf   : > { %p1192_p6 = por %p164_p3, %p45_p0  ;;  %s1113_s27 = smov [#allocation7]  }
  0x10   : > { %s1473_s24 = scalar_select %p1187_p4, 1, 0 }
  0x11   : > { %s1474_s25 = scalar_select %p1192_p6, 1, 0 }
  0x12   : > { %p1197_p8 = pnand %p656_p5, %p171_p7  ;;  %s183_s28 = sshll.u32 %s1113_s27, 4  ;;  %s1201_s28 = int_to_ptr.vmem [resolvable:$true] %s183_s28 }
  0x13   : > { %s1114_s30 = smov [#allocation8]   ;;  %s1477_s2 = sld [smem:[#allocation16_spill]] }
  0x14   : > { %s1475_s26 = scalar_select %p1197_p8, 1, 0 }
  0x15   : > { %p842_p9 = pneg %p1197_p8  ;;  %s196_s6 = sshll.u32 %s1114_s30, 4  ;;  %s1212_s6 = int_to_ptr.vmem [resolvable:$true] %s196_s6 }
  0x17   : > { %p1208_p11 = pnand %p842_p9, %p1467_p1 }
  0x19   : > { %s917_s9 = scalar_lea.hbm %s1477_s2, 2048  ;;  %p919_p13 = pneg %p1208_p11 }
  0x1a   : > { %p918_p12 = scmp.ne.s32.totalorder %s1477_s2, %s917_s9  ;;  %p924_p5 = scmp.lt.u32.totalorder %s917_s9, %s1477_s2 }
  0x1c   : > { %p920_p0 = pnand %p919_p13, %p918_p12 }
  0x1e   : > { %p921_p3 = pneg %p920_p0 }
  0x20   : > { %p926_p7 = pnand %p924_p5, %p921_p3 }
  0x22   : > { %929 = shalt.err (!%p926_p7)
}
  0x23   : > { %s930_s14 = scalar_lea.vmem %s1201_s28, 2048  ;;  %p938_p2 = scmp.lt.s32.totalorder %s1201_s28, %s1201_s28 }
  0x24   : > { %p931_p9 = scmp.ne.s32.totalorder %s1201_s28, %s930_s14  ;;  %p939_p12 = scmp.lt.s32.totalorder %s930_s14, %s930_s14 }
  0x26   : > { %p933_p10 = pnand %p931_p9, %p919_p13  ;;  %p940_p0 = por %p939_p12, %p938_p2 }
  0x28   : > { %p934_p1 = pneg %p933_p10 }
  0x2a   : > { %p941_p6 = pnand %p940_p0, %p934_p1 }
  0x2c   : > { %944 = shalt.err (!%p941_p6)
}
  0x2d   : > { %s1115_s15 = smov 128   ;;  %s1116_s16 = smov 8  }
  0x2e   : > { %845 = dma.hbm_to_vmem [thread:$0]  (!%p1208_p11), %s1477_s2, 2048, %s1201_s28, [#allocation6], %s1115_s15, %s1115_s15, %s1116_s16  }
  0x2f   : > { %s1478_s3 = sld [smem:[#allocation17_spill]] }
  0x35   : > { %s945_s7 = scalar_lea.hbm %s1478_s3, 2048 }
  0x36   : > { %p946_p2 = scmp.ne.s32.totalorder %s1478_s3, %s945_s7  ;;  %p952_p10 = scmp.lt.u32.totalorder %s945_s7, %s1478_s3 }
  0x38   : > { %p948_p1 = pnand %p946_p2, %p919_p13 }
  0x3a   : > { %p949_p6 = pneg %p948_p1 }
  0x3c   : > { %p954_p3 = pnand %p952_p10, %p949_p6 }
  0x3e   : > { %957 = shalt.err (!%p954_p3)
}
  0x3f   : > { %s958_s28 = scalar_lea.vmem %s1212_s6, 2048  ;;  %p966_p12 = scmp.lt.s32.totalorder %s1212_s6, %s1212_s6 }
  0x40   : > { %p959_p5 = scmp.ne.s32.totalorder %s1212_s6, %s958_s28  ;;  %p967_p0 = scmp.lt.s32.totalorder %s958_s28, %s958_s28 }
  0x42   : > { %p961_p7 = pnand %p959_p5, %p919_p13  ;;  %p968_p2 = por %p967_p0, %p966_p12 }
  0x44   : > { %p962_p9 = pneg %p961_p7 }
  0x46   : > { %p969_p1 = pnand %p968_p2, %p962_p9 }
  0x48   : > { %972 = shalt.err (!%p969_p1)
}
  0x49   : > { %848 = dma.hbm_to_vmem [thread:$0]  (!%p1208_p11), %s1478_s3, 2048, %s1212_s6, [#allocation9], %s1115_s15, %s1115_s15, %s1116_s16  }
  0x4a   : > { %s1267_s14 = sadd.s32 1, %s1111_s21   ;;  %s32_s29 = sadd.s32 1, %s1107_s20 }
  0x4b   : > { %s29_s17 = ssub.s32 %s1111_s21, %s1267_s14  ;;  %p39_p13 = scmp.ne.s32.totalorder %s1107_s20, %s1103_s19 }
  0x4c   : > { %p30_p6 = scmp.eq.s32.totalorder %s29_s17, 0  ;;  %p40_p10 = scmp.eq.s32.totalorder %s1111_s21, 0 }
  0x4d   : > { %p1479_p3 = scmp.eq.s32.totalorder %s1178_s22, 1  ;;  %p862_p7 = scmp.lt.s32.totalorder %s1111_s21, 2 }
  0x4e   : > { %s1283_s27 = scalar_select %p30_p6, %s1107_s20, %s32_s29  }
  0x4f   : > { %p1277_p5 = por %p1479_p3, %p39_p13  ;;  %p41_p9 = por %p40_p10, %p39_p13 }
  0x50   : > { %s213_s30 = sand.u32 1, %s1107_s20   ;;  %s661_s15 = sshll.u32 %s1111_s21, 7 }
  0x51   : > { %s1480_s23 = scalar_select %p1277_p5, 1, 0 }
  0x52   : > { %s1286_s6 = sshll.u32 %s213_s30, 3  ;;  %s1292_s8 = scalar_lea.hbm %s1461_s0, %s661_s15 }
  0x53   : > { %s217_s9 = scalar_lea.vmem [#allocation2], %s1286_s6  ;;  %p1297_p11 = pnand %p862_p7, %p41_p9 }
  0x54   : > { %s224_s10 = sshll.u32 %s217_s9, 4  ;;  %s1304_s13 = scalar_lea.hbm %s1462_s1, %s661_s15  ;;  %s1295_s10 = int_to_ptr.vmem [resolvable:$true] %s224_s10 }
  0x55   : > { %s231_s29 = sand.u32 1, %s1111_s21   ;;  %s214_s17 = scalar_lea.sflag [#allocation3], %s213_s30 }
  0x56   : > { %s973_s16 = scalar_lea.hbm %s1292_s8, 128  ;;  %p975_p0 = pneg %p1297_p11 }
  0x57   : > { %p974_p12 = scmp.ne.s32.totalorder %s1292_s8, %s973_s16  ;;  %s978_s2 = scalar_lea.hbm %s1461_s0, 256 }
  0x58   : > { %p979_p13 = scmp.lt.u32.totalorder %s1292_s8, %s1461_s0  ;;  %p980_p6 = scmp.lt.u32.totalorder %s978_s2, %s973_s16 }
  0x59   : > { %p976_p2 = pnand %p975_p0, %p974_p12  ;;  %p982_p3 = scmp.lt.u32.totalorder %s973_s16, %s1292_s8 }
  0x5a   : > { %p981_p10 = por %p980_p6, %p979_p13 }
  0x5b   : > { %p977_p1 = pneg %p976_p2 }
  0x5c   : > { %p983_p7 = por %p982_p3, %p981_p10 }
  0x5e   : > { %p984_p9 = pnand %p983_p7, %p977_p1 }
  0x60   : > { %987 = shalt.err (!%p984_p9)
}
  0x61   : > { %s988_s30 = scalar_lea.vmem %s1295_s10, 128  ;;  %s1117_s15 = smov [#allocation2]  }
  0x62   : > { %p989_p12 = scmp.ne.s32.totalorder %s1295_s10, %s988_s30  ;;  %s993_s12 = sshll.u32 %s1117_s15, 4  ;;  %s994_s12 = int_to_ptr.vmem [resolvable:$false] %s993_s12 }
  0x63   : > { %s995_s3 = scalar_lea.vmem %s994_s12, 256  ;;  %p996_p4 = scmp.lt.s32.totalorder %s1295_s10, %s994_s12 }
  0x64   : > { %p991_p2 = pnand %p989_p12, %p975_p0  ;;  %p997_p13 = scmp.lt.s32.totalorder %s995_s3, %s988_s30 }
  0x66   : > { %p992_p5 = pneg %p991_p2  ;;  %p998_p6 = por %p997_p13, %p996_p4 }
  0x68   : > { %p999_p10 = pnand %p998_p6, %p992_p5 }
  0x6a   : > { %1002 = shalt.err (!%p999_p10)
}
  0x6b   : > { %852 = dma.hbm_to_vmem [thread:$0]  (!%p1297_p11), %s1292_s8, 128, %s1295_s10, %s214_s17  }
  0x6c   : > { %s235_s2 = scalar_lea.vmem [#allocation5], %s1286_s6  ;;  %s232_s7 = scalar_lea.sflag [#allocation6], %s231_s29 }
  0x6d   : > { %s242_s16 = sshll.u32 %s235_s2, 4  ;;  %s1003_s9 = scalar_lea.hbm %s1304_s13, 128  ;;  %s243_s16 = int_to_ptr.vmem [resolvable:$true] %s242_s16 }
  0x6e   : > { %p1004_p4 = scmp.ne.s32.totalorder %s1304_s13, %s1003_s9  ;;  %s1008_s15 = scalar_lea.hbm %s1462_s1, 256 }
  0x6f   : > { %p1009_p3 = scmp.lt.u32.totalorder %s1304_s13, %s1462_s1  ;;  %p1010_p7 = scmp.lt.u32.totalorder %s1008_s15, %s1003_s9 }
  0x70   : > { %p1006_p5 = pnand %p1004_p4, %p975_p0  ;;  %p1012_p12 = scmp.lt.u32.totalorder %s1003_s9, %s1304_s13 }
  0x71   : > { %p1011_p9 = por %p1010_p7, %p1009_p3 }
  0x72   : > { %p1007_p1 = pneg %p1006_p5 }
  0x73   : > { %p1013_p2 = por %p1012_p12, %p1011_p9 }
  0x75   : > { %p1014_p13 = pnand %p1013_p2, %p1007_p1 }
  0x77   : > { %1017 = shalt.err (!%p1014_p13)
}
  0x78   : > { %s1018_s6 = scalar_lea.vmem %s243_s16, 128  ;;  %s1118_s8 = smov [#allocation5]  }
  0x79   : > { %p1019_p6 = scmp.ne.s32.totalorder %s243_s16, %s1018_s6  ;;  %s1023_s10 = sshll.u32 %s1118_s8, 4  ;;  %s1024_s10 = int_to_ptr.vmem [resolvable:$false] %s1023_s10 }
  0x7a   : > { %s1025_s29 = scalar_lea.vmem %s1024_s10, 256  ;;  %p1026_p5 = scmp.lt.s32.totalorder %s243_s16, %s1024_s10 }
  0x7b   : > { %p1021_p10 = pnand %p1019_p6, %p975_p0  ;;  %p1027_p8 = scmp.lt.s32.totalorder %s1025_s29, %s1018_s6 }
  0x7d   : > { %p1022_p4 = pneg %p1021_p10  ;;  %p1028_p3 = por %p1027_p8, %p1026_p5 }
  0x7f   : > { %p1029_p7 = pnand %p1028_p3, %p1022_p4 }
  0x81   : > { %1032 = shalt.err (!%p1029_p7)
}
  0x82   : > { %855 = dma.hbm_to_vmem [thread:$0]  (!%p1297_p11), %s1304_s13, 128, %s243_s16, %s232_s7  }
  0x83   : > { %p1482_p1 = scmp.ne.s32.totalorder %s1475_s26, 0 }
  0x84   : > { %s1357_s17 = sand.u32 (!%p1482_p1), 1, %s1103_s19   ;;  %p1483_p8 = scmp.ne.s32.totalorder (!%p1482_p1), %s1473_s24, 0 }
  0x85   : > { %251 = sbr.rel (%p1482_p1) target bundleno = 899 (0x383), region = 40  ;;  %s1360_s2 = sshll.u32 (!%p1482_p1), %s1357_s17, 3 }
  0x86   : > { %s254_s9 = scalar_lea.sflag (!%p1482_p1), [#allocation3], %s1357_s17  ;;  %s257_s28 = scalar_lea.vmem (!%p1482_p1), [#allocation2], %s1360_s2 }
  0x8c   : > { %1078 = dma.done.wait (%p1483_p8), %s254_s9, 128  }
  0x8d   : > { %1080 = vsyncadd (%p1483_p8), %s254_s9, 4294967168  ;;  %s262_s26 = sand.u32 1, %s1178_s22   ;;  %s266_s13 = scalar_lea.vmem [#allocation5], %s1360_s2 }
  0x8e   : > { %s263_s11 = scalar_lea.sflag [#allocation6], %s262_s26 }
  0x8f   : > { %1082 = dma.done.wait (%p1483_p8), %s263_s11, 128  }
  0x90   : > { %1084 = vsyncadd (%p1483_p8), %s263_s11, 4294967168  ;;  %p1484_p11 = scmp.eq.s32.totalorder %s1178_s22, 0 }
  0x92   : > { %1086 = dma.done.wait (%p1484_p11), [#allocation6], 2048   ;;  %p1485_p0 = pmov %p1484_p11 }
  0x94   : > { %1088 = vsyncadd (%p1485_p0), [#allocation6], 4294965248  ;;  %p1486_p9 = pmov %p1485_p0 }
  0x95   : > { %p1487_p12 = pmov %p1485_p0 }
  0x96   : > { %1090 = dma.done.wait (%p1486_p9), [#allocation9], 2048  }
  0x97   : > { %1092 = vsyncadd (%p1487_p12), [#allocation9], 4294965248  ;;  %v1119_v0 = vmov 0.0|0.0   ;;  %vm1120_vm0 = vmmov 0   ;;  %v1121_v1 = vmov 0.0   ;;  %v1122_v2 = vmov 16  }
  0x98   : > { %780 = vmatprep.subr.bf16.mxu0 %v1119_v0  ;;  %804 = vmatprep.subr.bf16.mxu1 %v1119_v0  ;;  %v324_v3 = vld [vmem:[#allocation8] sm:$0xff]  ;;  %v325_v4 = vld [vmem:[#allocation8 + $0x8] sm:$0xff]  ;;  %v326_v8 = vld [vmem:[#allocation8 + $0x10] sm:$0xff]  ;;  %s1123_s24 = smov 64   ;;  %s1124_s30 = smov 32   ;;  %vm526_vm1 = vcmask 261120  }
  0x99   : > { %742 = vmatprep.mubr.msk.f32.mxu0 %vm1120_vm0, %v1121_v1  ;;  %777 = vmatprep.mubr.msk.f32.mxu1 %vm1120_vm0, %v1121_v1  ;;  %v308_v5 = vld [vmem:[#allocation7] sm:$0xff]  ;;  %v781_v6 = vpack.c.bf16 %v325_v4, %v324_v3  ;;  %v309_v7 = vld [vmem:[#allocation7 + $0x8] sm:$0xff]  ;;  %v327_v9 = vld [vmem:[#allocation8 + $0x18] sm:$0xff]  ;;  %s1125_s15 = smov 96   ;;  %s673_s12 = sshll.u32 %s1178_s22, 7 }
  0x9a   : > { %909 = vset.pattern.permute.xlu1 %v1122_v2  ;;  %910 = vset.pattern.permute.xlu0 %v1122_v2  ;;  %v805_v10 = vpack.c.bf16 %v309_v7, %v308_v5  ;;  %v310_v11 = vld [vmem:[#allocation7 + $0x10] sm:$0xff]  ;;  %v311_v12 = vld [vmem:[#allocation7 + $0x18] sm:$0xff]  ;;  %v784_v13 = vpack.c.bf16 %v327_v9, %v326_v8  ;;  %v328_v15 = vld [vmem:[#allocation8 + $0x20] sm:$0xff]  ;;  %s305_s3 = scalar_lea.vmem [#allocation10], %s1360_s2  ;;  %s1417_s29 = scalar_lea.hbm %s1466_s5, %s673_s12 }
  0x9b   : > { %782 = vmatpush3.bf16.msra.mxu0 %v781_v6  ;;  %v808_v14 = vpack.c.bf16 %v311_v12, %v310_v11  ;;  %v329_v16 = vld [vmem:[#allocation8 + $0x28] sm:$0xff]  ;;  %v312_v17 = vld [vmem:[#allocation7 + $0x20] sm:$0xff]  ;;  %v330_v21 = vld [vmem:[#allocation8 + $0x30] sm:$0xff]  ;;  %s543_s6 = sshll.u32 %s305_s3, 4  ;;  %s530_s9 = scalar_lea.sflag [#allocation4], %s1357_s17  ;;  %s1419_s6 = int_to_ptr.vmem [resolvable:$true] %s543_s6 }
  0x9c   : > { %806 = vmatpush3.bf16.msra.mxu1 %v805_v10  ;;  %783 = vmatprep.subr.bf16.mxu0 %v1119_v0  ;;  %v313_v18 = vld [vmem:[#allocation7 + $0x28] sm:$0xff]  ;;  %v787_v19 = vpack.c.bf16 %v329_v16, %v328_v15  ;;  %v331_v22 = vld [vmem:[#allocation8 + $0x38] sm:$0xff]  ;;  %v314_v23 = vld [vmem:[#allocation7 + $0x30] sm:$0xff]  ;;  %s1033_s22 = scalar_lea.vmem %s1419_s6, 128  ;;  %p1488_p13 = scmp.ne.s32.totalorder %s1480_s23, 0 }
  0x9d   : > { %807 = vmatprep.subr.bf16.mxu1 %v1119_v0  ;;  %v811_v20 = vpack.c.bf16 %v313_v18, %v312_v17  ;;  %v315_v24 = vld [vmem:[#allocation7 + $0x38] sm:$0xff]  ;;  %v790_v26 = vpack.c.bf16 %v331_v22, %v330_v21  ;;  %v332_v28 = vld [vmem:[#allocation8 + $0x40] sm:$0xff]  ;;  %v333_v29 = vld [vmem:[#allocation8 + $0x48] sm:$0xff]  ;;  %p1034_p2 = scmp.ne.s32.totalorder %s1419_s6, %s1033_s22  ;;  %s1126_s2 = smov [#allocation10]  }
  0x9e   : > { %v1390_v25 = vld [vmem:[%s266_s13] sm:$0xff]  ;;  %v814_v27 = vpack.c.bf16 %v315_v24, %v314_v23  ;;  %v316_v30 = vld [vmem:[#allocation7 + $0x40] sm:$0xff]  ;;  %v317_v31 = vld [vmem:[#allocation7 + $0x48] sm:$0xff]  ;;  %v793_v33 = vpack.c.bf16 %v333_v29, %v332_v28 }
  0x9f   : > { %785 = vmatpush3.bf16.msra.mxu0 %v784_v13  ;;  %512 = vrot.lane.b32.xlu1 %v1390_v25, %s1123_s24  ;;  %v306_v32 = vld [vmem:[%s257_s28] sm:$0xff]  ;;  %v817_v34 = vpack.c.bf16 %v317_v31, %v316_v30  ;;  %v334_v35 = vld [vmem:[#allocation8 + $0x50] sm:$0xff]  ;;  %v335_v36 = vld [vmem:[#allocation8 + $0x58] sm:$0xff]  ;;  %p1035_p6 = pnand %p1034_p2, %p1488_p13  ;;  %s1037_s28 = sshll.u32 %s1126_s2, 4  ;;  %s1038_s28 = int_to_ptr.vmem [resolvable:$false] %s1037_s28 }
  0xa0   : > { %809 = vmatpush3.bf16.msra.mxu1 %v808_v14  ;;  %786 = vmatprep.subr.bf16.mxu0 %v1119_v0  ;;  %v318_v37 = vld [vmem:[#allocation7 + $0x50] sm:$0xff]  ;;  %v319_v38 = vld [vmem:[#allocation7 + $0x58] sm:$0xff]  ;;  %v796_v39 = vpack.c.bf16 %v335_v36, %v334_v35  ;;  %v336_v41 = vld [vmem:[#allocation8 + $0x60] sm:$0xff]  ;;  %s1039_s26 = scalar_lea.vmem %s1038_s28, 256  ;;  %p1040_p4 = scmp.lt.s32.totalorder %s1419_s6, %s1038_s28 }
  0xa1   : > { %810 = vmatprep.subr.bf16.mxu1 %v1119_v0  ;;  %v820_v40 = vpack.c.bf16 %v319_v38, %v318_v37  ;;  %v337_v42 = vld [vmem:[#allocation8 + $0x68] sm:$0xff]  ;;  %v320_v43 = vld [vmem:[#allocation7 + $0x60] sm:$0xff]  ;;  %v338_v47 = vld [vmem:[#allocation8 + $0x70] sm:$0xff]  ;;  %p1036_p10 = pneg %p1035_p6  ;;  %p1041_p5 = scmp.lt.s32.totalorder %s1039_s26, %s1033_s22 }
  0xa2   : > { %v321_v44 = vld [vmem:[#allocation7 + $0x68] sm:$0xff]  ;;  %v799_v45 = vpack.c.bf16 %v337_v42, %v336_v41  ;;  %v339_v48 = vld [vmem:[#allocation8 + $0x78] sm:$0xff]  ;;  %v322_v49 = vld [vmem:[#allocation7 + $0x70] sm:$0xff] }
  0xa3   : > { %788 = vmatpush3.bf16.msra.mxu0 %v787_v19  ;;  %507 = vperm.xlu1 %909, %v306_v32   ;;  %v823_v46 = vpack.c.bf16 %v321_v44, %v320_v43  ;;  %v323_v50 = vld [vmem:[#allocation7 + $0x78] sm:$0xff]  ;;  %v802_v51 = vpack.c.bf16 %v339_v48, %v338_v47  ;;  %v670_v55 = vld [vmem:[%s1465_s4] ss:$0 sm:$0xff]  ;;  %p1042_p3 = por %p1041_p5, %p1040_p4 }
  0xa4   : > { %812 = vmatpush3.bf16.msra.mxu1 %v811_v20  ;;  %789 = vmatprep.subr.bf16.mxu0 %v1119_v0  ;;  %v826_v52 = vpack.c.bf16 %v323_v50, %v322_v49 }
  0xa5   : > { %813 = vmatprep.subr.bf16.mxu1 %v1119_v0  ;;  %p1043_p7 = pnand %p1042_p3, %p1036_p10 }
  0xa7   : > { %791 = vmatpush3.bf16.msra.mxu0 %v790_v26 }
  0xa8   : > { %815 = vmatpush3.bf16.msra.mxu1 %v814_v27  ;;  %792 = vmatprep.subr.bf16.mxu0 %v1119_v0 }
  0xa9   : > { %816 = vmatprep.subr.bf16.mxu1 %v1119_v0 }
  0xab   : > { %794 = vmatpush3.bf16.msra.mxu0 %v793_v33 }
  0xac   : > { %818 = vmatpush3.bf16.msra.mxu1 %v817_v34  ;;  %795 = vmatprep.subr.bf16.mxu0 %v1119_v0 }
  0xad   : > { %819 = vmatprep.subr.bf16.mxu1 %v1119_v0 }
  0xaf   : > { %797 = vmatpush3.bf16.msra.mxu0 %v796_v39 }
  0xb0   : > { %821 = vmatpush3.bf16.msra.mxu1 %v820_v40  ;;  %798 = vmatprep.subr.bf16.mxu0 %v1119_v0 }
  0xb1   : > { %822 = vmatprep.subr.bf16.mxu1 %v1119_v0 }
  0xb3   : > { %800 = vmatpush3.bf16.msra.mxu0 %v799_v45 }
  0xb4   : > { %824 = vmatpush3.bf16.msra.mxu1 %v823_v46  ;;  %801 = vmatprep.subr.bf16.mxu0 %v1119_v0 }
  0xb5   : > { %825 = vmatprep.subr.bf16.mxu1 %v1119_v0 }
  0xb7   : > { %803 = vmatpush3.bf16.msra.mxu0 %v802_v51 }
  0xb8   : > { %827 = vmatpush3.bf16.msra.mxu1 %v826_v52 }
  0xba   : > { %743 = vmatmul.mubr.f32.vlgmr.msra.gmra.mrb[0].mxu0 %v1390_v25 }
  0xbb   : > { %778 = vmatmul.mubr.f32.vlgmr.msra.gmra.mrb[0].mxu1 %v306_v32 }
 0x111   : > { %v513_v5 = vpop.permute.xlu1 %512 }
 0x122   : > { %v508_v7 = vpop.permute.xlu1 %507 }
 0x18d   : > { %v406_v53 = vpop.f32.mrb[0].mxu0 }
 0x18e   : > { %v476_v54 = vpop.f32.mrb[0].mxu1  ;;  %v744_v56 = vpop.f32.mrb[1].mxu0 }
 0x18f   : > { %v477_v57 = vadd.f32 %v476_v54, %v406_v53  ;;  %v779_v58 = vpop.f32.mrb[1].mxu1 }
 0x191   : > { %v487_v59 = vadd.f32 %v670_v55, %v477_v57 }
 0x193   : > { %495 = vrot.lane.b32.xlu0 %v487_v59, %s1124_s30  ;;  %v671_v60 = vmul.f32 -1.442695, %v487_v59 }
 0x195   : > { %911 = vpow2.f32 %v671_v60 }
 0x19f   : > { %v912_v61 = vpop.eup %911 }
 0x1a0   : > { %v491_v62 = vadd.f32 1.0, %v912_v61 }
 0x1a2   : > { %913 = vrcp.f32 %v491_v62 }
 0x1ac   : > { %v914_v63 = vpop.eup %913 }
 0x1ad   : > { %v510_v8 = vmul.f32 %v914_v63, %v508_v7 }
 0x205   : > { %v496_v0 = vpop.permute.xlu0 %495 }
 0x206   : > { %v498_v1 = vmul.f32 %v914_v63, %v496_v0 }
 0x208   : > { %500 = vrot.lane.b32.xlu0 %v498_v1, %s1123_s24 }
 0x27a   : > { %v501_v2 = vpop.permute.xlu0 %500 }
 0x27b   : > { %v503_v3 = vadd.f32 %v501_v2, %v487_v59 }
 0x27d   : > { %915 = vtanh.f32 %v503_v3 }
 0x287   : > { %v916_v4 = vpop.eup %915 }
 0x288   : > { %v515_v6 = vsub.f32 %v916_v4, %v513_v5 }
 0x28a   : > { %517 = vrot.lane.b32.xlu0 %v515_v6, %s1125_s15 }
 0x2fc   : > { %v518_v9 = vpop.permute.xlu0 %517 }
 0x2fd   : > { %v520_v10 = vmul.f32 %v518_v9, %v510_v8 }
 0x2ff   : > { %522 = vrot.lane.b32.xlu1 %v520_v10, %s1125_s15 }
 0x371   : > { %v523_v11 = vpop.permute.xlu1 %522 }
 0x372   : > { %v525_v12 = vadd.f32 %v523_v11, %v1390_v25 }
 0x374   : > { %v527_v13 = vsel %vm526_vm1, %v525_v12, 0.0 }
 0x375   : > { %528 = vst [vmem:[%s305_s3] sm:$0xff] %v527_v13 }
 0x376   : > { %1046 = shalt.err (!%p1043_p7)
}
 0x377   : > { %s1047_s17 = scalar_lea.hbm %s1417_s29, 128  ;;  %s1051_s24 = scalar_lea.hbm %s1466_s5, 256 }
 0x378   : > { %p1048_p1 = scmp.ne.s32.totalorder %s1417_s29, %s1047_s17  ;;  %p1052_p0 = scmp.lt.u32.totalorder %s1417_s29, %s1466_s5 }
 0x379   : > { %p1053_p9 = scmp.lt.u32.totalorder %s1051_s24, %s1047_s17  ;;  %p1055_p2 = scmp.lt.u32.totalorder %s1047_s17, %s1417_s29 }
 0x37a   : > { %p1049_p8 = pnand %p1048_p1, %p1488_p13 }
 0x37b   : > { %p1054_p12 = por %p1053_p9, %p1052_p0 }
 0x37c   : > { %p1050_p11 = pneg %p1049_p8 }
 0x37d   : > { %p1056_p6 = por %p1055_p2, %p1054_p12 }
 0x37f   : > { %p1057_p10 = pnand %p1056_p6, %p1050_p11 }
 0x381   : > { %1060 = shalt.err (!%p1057_p10)
}
 0x382   : > { %840 = dma.vmem_to_hbm [thread:$0]  (%p1488_p13), %s1419_s6, 128, %s1417_s29, %s530_s9  }
 0x383 PF: > { %s555_s30 = sand.u32 1, %s1099_s18   ;;  %p1489_p4 = scmp.ne.s32.totalorder %s1474_s25, 0 }
 0x384   : > { %p1490_p5 = scmp.ge.s32.totalorder %s1111_s21, 2  ;;  %s556_s15 = scalar_lea.sflag [#allocation4], %s555_s30 }
 0x386   : > { %p857_p3 = pnand %p1490_p5, %p1489_p4 }
 0x388   : > { %1094 = dma.done.wait (!%p857_p3), %s556_s15, 128  }
 0x389   : > { %1096 = vsyncadd (!%p857_p3), %s556_s15, 4294967168  ;;  %p22_p7 = scmp.ge.s32.totalorder %s1267_s14, 4   ;;  %s1491_s18 = smov %s1103_s19 }
 0x38a   : > { %s1492_s19 = smov %s1107_s20  ;;  %s1493_s20 = smov %s1283_s27 }
 0x38b   : > { %s1494_s21 = smov %s1267_s14  ;;  %24 = sbr.rel (!%p22_p7) target bundleno = 11 (0xb), region = 106 }
 0x392   :  { %561 = vsyncpa [#allocation3], 1 }
 0x393   :  { %563 = vsyncpa [#allocation3 + $0x1], 1 }
 0x394   :  { %564 = vsyncpa [#allocation6], 1 }
 0x395   :  { %566 = vsyncpa [#allocation6 + $0x1], 1 }
 0x396   :  { %567 = vsyncpa [#allocation9], 1 }
 0x397   :  { %568 = vsyncpa [#allocation4], 1 }
 0x398   :  { %570 = vsyncpa [#allocation4 + $0x1], 1 }

</bundles_post_ra>
